<compile_context>
chip_gen: v7x
topology: tpu7x:2x2x1
jax: 0.10.0
libtpu: 0.0.40
codegen_flags: <defaults>
</compile_context>

<pallas_src>
import functools

import numpy as np

import jax
import jax.numpy as jnp
from jax.experimental import pallas as pl
from jax.experimental.pallas import tpu as pltpu


# ----------------------------- Pallas kernel ------------------------------ #
def _detect_kernel(lvl_ref, x_ref, w_ref, abc_ref, gxy_ref, raw_ref, dec_ref,
                   *, no):
    del lvl_ref                     # only consumed by the index_maps
    w = w_ref[0]                    # (N, K)   bf16/f32 conv weight (this level)
    abc = abc_ref[0]                # (N, 3)   f32 columns: [bias | A | B]
    # 1x1 conv == MXU matmul, f32 accumulation, lane-dense (N, tm) result.
    p = jnp.dot(w, x_ref[...], preferred_element_type=jnp.float32)
    p = p + abc[:, 0:1]
    raw_ref[...] = p                # pre-sigmoid conv output ("x" path)
    s = jax.nn.sigmoid(p)           # EUP transcendental, f32
    # Per-column grid offset C built on the VPU from a (2, tm) gx/gy stream
    # and a per-row box-channel mask (o = row % no):
    o = jax.lax.broadcasted_iota(jnp.int32, (w.shape[0], 1), 0) % no
    c = jnp.where(o == 0, gxy_ref[0:1, :],
                  jnp.where(o == 1, gxy_ref[1:2, :], 0.0))
    # Fused decode as an FMA chain: xy=(2s+g)*stride, wh=(2s)^2*anchor, conf=s.
    dec_ref[...] = (abc[:, 1:2] * s + abc[:, 2:3]) * s + c


# ------------------------------ glue / wrapper ----------------------------- #
def _round_up(v, m):
    return -(-v // m) * m


def detect_forward(xs_nchw, weights, biases, anchors, strides, *, nc, na,
                   matmul_dtype=jnp.bfloat16, tm_max=1024):
    """Inference forward of Detect: returns (z_cat, [x_i permuted])."""
    no = nc + 5
    N = na * no
    nl = len(xs_nchw)

    o_idx = np.arange(N) % no                 # box channel within an anchor
    a_idx = np.arange(N) // no                # anchor index
    is_xy = jnp.asarray(o_idx < 2)
    is_wh = jnp.asarray((o_idx >= 2) & (o_idx < 4))

    Ms = [x.shape[0] * x.shape[2] * x.shape[3] for x in xs_nchw]
    K_max = _round_up(max(x.shape[1] for x in xs_nchw), 8)
    # Large tiles amortize per-grid-step overhead; tm_max=1024 keeps the
    # double-buffered working set well inside v7x's 64 MiB VMEM even at real
    # YOLO shapes (K<=512, N<=256).
    tm = min(tm_max, _round_up(max(Ms), 128))

    x_cols, gxy_cols, w_stk, abc_stk = [], [], [], []
    lvl_ids, meta = [], []
    off = 0
    for i, x in enumerate(xs_nchw):
        bs, ch, ny, nx = x.shape
        M = bs * ny * nx
        Mp = _round_up(M, tm)
        # Activations: NCHW -> (ch, bs*ny*nx), zero-pad to (K_max, Mp).
        x2 = jnp.transpose(x, (1, 0, 2, 3)).reshape(ch, M).astype(jnp.float32)
        x2 = jnp.pad(x2, ((0, K_max - ch), (0, Mp - M)))
        x_cols.append(x2.astype(matmul_dtype))
        # Conv weight in native (out_ch=N, in_ch) layout, zero-pad K.
        w = jnp.pad(weights[i].astype(jnp.float32), ((0, 0), (0, K_max - ch)))
        w_stk.append(w.astype(matmul_dtype))
        # Per-row decode coefficients [bias | A | B]  (strides stays traced).
        anchor_wh = (anchors[i] * strides[i]).astype(jnp.float32)   # (na, 2)
        coef_a = jnp.where(
            is_wh, 4.0 * anchor_wh[a_idx, np.clip(o_idx - 2, 0, 1)], 0.0)
        coef_b = jnp.where(is_xy, 2.0 * strides[i],
                           jnp.where(is_wh, 0.0, 1.0))
        abc_stk.append(jnp.stack(
            [biases[i].astype(jnp.float32), coef_a, coef_b], axis=-1))
        # Per-column grid offsets with stride folded in: only 2 rows streamed
        # (vs the old full (M, N) coef_c array).
        yv, xv = jnp.meshgrid(jnp.arange(ny, dtype=jnp.float32),
                              jnp.arange(nx, dtype=jnp.float32), indexing="ij")
        gx = jnp.tile(((xv - 0.5) * strides[i]).reshape(-1), bs)
        gy = jnp.tile(((yv - 0.5) * strides[i]).reshape(-1), bs)
        gxy_cols.append(jnp.pad(jnp.stack([gx, gy], axis=0),
                                ((0, 0), (0, Mp - M))))

        lvl_ids.extend([i] * (Mp // tm))
        meta.append((off, bs, ny, nx, M))
        off += Mp

    M_tot = off
    num_tiles = len(lvl_ids)
    x_all = jnp.concatenate(x_cols, axis=1)          # (K_max, M_tot)
    gxy_all = jnp.concatenate(gxy_cols, axis=1)      # (2, M_tot)
    w_all = jnp.stack(w_stk, axis=0)                 # (nl, N, K_max)
    abc_all = jnp.stack(abc_stk, axis=0)             # (nl, N, 3)
    lvl_arr = jnp.asarray(lvl_ids, dtype=jnp.int32)  # per-tile level id

    raw_all, dec_all = pl.pallas_call(
        functools.partial(_detect_kernel, no=no),
        out_shape=(jax.ShapeDtypeStruct((N, M_tot), jnp.float32),
                   jax.ShapeDtypeStruct((N, M_tot), jnp.float32)),
        grid_spec=pltpu.PrefetchScalarGridSpec(
            num_scalar_prefetch=1,
            grid=(num_tiles,),
            in_specs=[
                pl.BlockSpec((K_max, tm), lambda t, lv: (0, t)),          # X
                pl.BlockSpec((1, N, K_max), lambda t, lv: (lv[t], 0, 0)), # W
                pl.BlockSpec((1, N, 3), lambda t, lv: (lv[t], 0, 0)),     # bias/A/B
                pl.BlockSpec((2, tm), lambda t, lv: (0, t)),              # gx/gy
            ],
            out_specs=[pl.BlockSpec((N, tm), lambda t, lv: (0, t)),
                       pl.BlockSpec((N, tm), lambda t, lv: (0, t))],
        ),
        compiler_params=pltpu.CompilerParams(
            dimension_semantics=("parallel",)),
    )(lvl_arr, x_all, w_all, abc_all, gxy_all)

    # Split back per level and lay out like PyTorch Detect.
    z, x_outs = [], []
    for (off_i, bs, ny, nx, M) in meta:
        raw5 = (raw_all[:, off_i:off_i + M]
                .reshape(na, no, bs, ny, nx).transpose(2, 0, 3, 4, 1))
        dec5 = (dec_all[:, off_i:off_i + M]
                .reshape(na, no, bs, ny, nx).transpose(2, 0, 3, 4, 1))
        x_outs.append(raw5)                               # (bs, na, ny, nx, no)
        z.append(dec5.reshape(bs, na * ny * nx, no))
    # TODO(synk): the final (na,no,bs,ny,nx)->(bs,na,ny,nx,no) permutes run in
    # XLA; keeping the surrounding model NHWC end-to-end would remove them.
    return jnp.concatenate(z, axis=1), x_outs


# --------------------------- pure-JAX reference ---------------------------- #
def detect_forward_ref(xs_nchw, weights, biases, anchors, strides, *, nc, na):
    no = nc + 5
    z, x_outs = [], []
    for i, x in enumerate(xs_nchw):
        bs, ch, ny, nx = x.shape
        p = jnp.einsum("bchw,oc->bohw", x, weights[i],
                       precision=jax.lax.Precision.HIGHEST)
        p = p + biases[i][None, :, None, None]
        p = p.reshape(bs, na, no, ny, nx).transpose(0, 1, 3, 4, 2)
        x_outs.append(p)
        s = jax.nn.sigmoid(p)
        yv, xv = jnp.meshgrid(jnp.arange(ny, dtype=jnp.float32),
                              jnp.arange(nx, dtype=jnp.float32), indexing="ij")
        grid = jnp.stack((xv, yv), axis=-1) - 0.5
        grid = jnp.broadcast_to(grid[None, None], (1, na, ny, nx, 2))
        anchor_grid = (anchors[i] * strides[i]).reshape(1, na, 1, 1, 2)
        xy = (s[..., 0:2] * 2 + grid) * strides[i]
        wh = (s[..., 2:4] * 2) ** 2 * anchor_grid
        y = jnp.concatenate((xy, wh, s[..., 4:]), axis=-1)
        z.append(y.reshape(bs, na * ny * nx, no))
    return jnp.concatenate(z, axis=1), x_outs


# ---------------------------------- main ----------------------------------- #
if __name__ == "__main__":
    key = jax.random.PRNGKey(0)

    # Small Detect config: 2 levels, 3 anchors/level, nc=3 classes (no=8)
    nc, na, nl = 3, 3, 2
    no = nc + 5
    ch = (8, 16)                       # input channels per level
    spatial = ((16, 16), (8, 8))       # (ny, nx) per level
    bs = 2
    strides = jnp.array([8.0, 16.0], dtype=jnp.float32)
    anchors = jnp.array(
        [[10, 13, 16, 30, 33, 23],
         [30, 61, 62, 45, 59, 119]], dtype=jnp.float32).reshape(nl, na, 2)

    keys = jax.random.split(key, 3 * nl)
    weights, biases, xs = [], [], []
    for i in range(nl):
        weights.append(0.1 * jax.random.normal(
            keys[3 * i], (na * no, ch[i]), dtype=jnp.float32))
        biases.append(0.05 * jax.random.normal(
            keys[3 * i + 1], (na * no,), dtype=jnp.float32))
        ny, nx = spatial[i]
        xs.append(jax.random.normal(
            keys[3 * i + 2], (bs, ch[i], ny, nx), dtype=jnp.float32))

    fwd_f32 = jax.jit(functools.partial(
        detect_forward, nc=nc, na=na, matmul_dtype=jnp.float32))
    fwd_bf16 = jax.jit(functools.partial(
        detect_forward, nc=nc, na=na, matmul_dtype=jnp.bfloat16))

    z_ref, x_ref = detect_forward_ref(
        xs, weights, biases, anchors, strides, nc=nc, na=na)

    # f32 MXU-input path: tight check against the pure-JAX reference.
    z_pl, x_pl = fwd_f32(xs, weights, biases, anchors, strides)
    jax.block_until_ready(z_pl)
    for xo in x_pl:
        jax.block_until_ready(xo)
    assert z_pl.shape == (bs, sum(na * h * w for (h, w) in spatial), no)
    assert jnp.allclose(z_pl, z_ref, rtol=1e-2, atol=1e-2), "z mismatch (f32)"
    for a, b in zip(x_pl, x_ref):
        assert a.shape == b.shape
        assert jnp.allclose(a, b, rtol=1e-2, atol=1e-2), "x mismatch (f32)"

    # bf16 MXU-input path (default, per perf review): bf16-appropriate tol.
    z_bf, x_bf = fwd_bf16(xs, weights, biases, anchors, strides)
    jax.block_until_ready(z_bf)
    assert z_bf.shape == z_ref.shape
    assert jnp.allclose(z_bf, z_ref, rtol=5e-2, atol=1e-1), "z mismatch (bf16)"
    for a, b in zip(x_bf, x_ref):
        assert a.shape == b.shape
        assert jnp.allclose(a, b, rtol=5e-2, atol=5e-2), "x mismatch (bf16)"

    print("KERNEL_OK")
</pallas_src>

<mosaic_0001>
module attributes {stable_mosaic.version = 11 : i64} {
  func.func @_detect_kernel(%arg0: i32, %arg1: memref<2xi32, #tpu.memory_space<smem>>, %arg2: memref<16x512xf32, #tpu.memory_space<vmem>>, %arg3: memref<1x24x16xf32, #tpu.memory_space<vmem>>, %arg4: memref<1x24x3xf32, #tpu.memory_space<vmem>>, %arg5: memref<2x512xf32, #tpu.memory_space<vmem>>, %arg6: memref<24x512xf32, #tpu.memory_space<vmem>>, %arg7: memref<24x512xf32, #tpu.memory_space<vmem>>) attributes {dimension_semantics = [#tpu.dimension_semantics<parallel>], iteration_bounds = array<i64: 2>, scalar_prefetch = 1 : i64, scratch_operands = 0 : i64, tpu.core_type = #tpu.core_type<tc>, window_params = [{transform_indices = @transform_0, window_bounds = array<i64: 16, 512>}, {transform_indices = @transform_1, window_bounds = array<i64: 1, 24, 16>}, {transform_indices = @transform_2, window_bounds = array<i64: 1, 24, 3>}, {transform_indices = @transform_3, window_bounds = array<i64: 2, 512>}, {transform_indices = @transform_4, window_bounds = array<i64: 24, 512>}, {transform_indices = @transform_5, window_bounds = array<i64: 24, 512>}]} {
    %c0 = arith.constant 0 : index
    %c0_0 = arith.constant 0 : index
    %c0_1 = arith.constant 0 : index
    %0 = vector.load %arg3[%c0, %c0_0, %c0_1] : memref<1x24x16xf32, #tpu.memory_space<vmem>>, vector<1x24x16xf32>
    %1 = vector.shape_cast %0 : vector<1x24x16xf32> to vector<24x16xf32>
    %c0_2 = arith.constant 0 : index
    %c0_3 = arith.constant 0 : index
    %c0_4 = arith.constant 0 : index
    %2 = vector.load %arg4[%c0_2, %c0_3, %c0_4] : memref<1x24x3xf32, #tpu.memory_space<vmem>>, vector<1x24x3xf32>
    %3 = vector.shape_cast %2 : vector<1x24x3xf32> to vector<24x3xf32>
    %c0_5 = arith.constant 0 : index
    %c0_6 = arith.constant 0 : index
    %4 = vector.load %arg2[%c0_5, %c0_6] : memref<16x512xf32, #tpu.memory_space<vmem>>, vector<16x512xf32>
    %cst = arith.constant dense<0.000000e+00> : vector<24x512xf32>
    %5 = tpu.matmul %1, %4, %cst {dimension_numbers = #tpu.dot_dimension_numbers<[1], [0], [0], [1], [0, 0, 1, 1], [], []>} : vector<24x16xf32>, vector<16x512xf32>, vector<24x512xf32> -> vector<24x512xf32>
    %6 = vector.extract_strided_slice %3 {offsets = [0, 0], sizes = [24, 1], strides = [1, 1]} : vector<24x3xf32> to vector<24x1xf32>
    %7 = vector.broadcast %6 : vector<24x1xf32> to vector<24x512xf32>
    %8 = arith.addf %5, %7 : vector<24x512xf32>
    %c0_7 = arith.constant 0 : index
    %c0_8 = arith.constant 0 : index
    %9 = vector.load %arg6[%c0_7, %c0_8] : memref<24x512xf32, #tpu.memory_space<vmem>>, vector<24x512xf32>
    tpu.vector_store %arg6[%c0_7, %c0_8], %8 {strides = array<i32>} : memref<24x512xf32, #tpu.memory_space<vmem>>, vector<24x512xf32>,
    %10 = arith.negf %8 : vector<24x512xf32>
    %11 = math.exp %10 : vector<24x512xf32>
    %cst_9 = arith.constant 1.000000e+00 : f32
    %12 = vector.broadcast %cst_9 : f32 to vector<24x512xf32>
    %13 = arith.addf %12, %11 : vector<24x512xf32>
    %14 = arith.divf %12, %13 : vector<24x512xf32>
    %15 = tpu.iota {dimensions = array<i32: 0>} : vector<24x1xi32>
    %c8_i32 = arith.constant 8 : i32
    %c0_i32 = arith.constant 0 : i32
    %16 = arith.cmpi eq, %c8_i32, %c0_i32 : i32
    %c1_i32 = arith.constant 1 : i32
    %17 = arith.select %16, %c1_i32, %c8_i32 : i32
    %18 = vector.broadcast %17 : i32 to vector<24x1xi32>
    %19 = arith.remsi %15, %18 : vector<24x1xi32>
    %c0_i32_10 = arith.constant 0 : i32
    %20 = vector.broadcast %c0_i32_10 : i32 to vector<24x1xi32>
    %21 = arith.cmpi ne, %19, %20 : vector<24x1xi32>
    %c0_i32_11 = arith.constant 0 : i32
    %22 = vector.broadcast %c0_i32_11 : i32 to vector<24x1xi32>
    %23 = arith.cmpi slt, %19, %22 : vector<24x1xi32>
    %c0_i32_12 = arith.constant 0 : i32
    %24 = arith.cmpi slt, %17, %c0_i32_12 : i32
    %25 = vector.broadcast %24 : i1 to vector<24x1xi1>
    %26 = vector.broadcast %25 : vector<24x1xi1> to vector<24x1xi1>
    %27 = arith.xori %23, %26 : vector<24x1xi1>
    %28 = arith.andi %27, %21 : vector<24x1xi1>
    %29 = vector.broadcast %17 : i32 to vector<24x1xi32>
    %30 = arith.addi %19, %29 : vector<24x1xi32>
    %31 = arith.select %28, %30, %19 : vector<24x1xi1>, vector<24x1xi32>
    %c0_i32_13 = arith.constant 0 : i32
    %32 = vector.broadcast %c0_i32_13 : i32 to vector<24x1xi32>
    %33 = arith.cmpi eq, %31, %32 : vector<24x1xi32>
    %c0_14 = arith.constant 0 : index
    %c0_15 = arith.constant 0 : index
    %34 = vector.load %arg5[%c0_14, %c0_15] : memref<2x512xf32, #tpu.memory_space<vmem>>, vector<1x512xf32>
    %c1_i32_16 = arith.constant 1 : i32
    %35 = vector.broadcast %c1_i32_16 : i32 to vector<24x1xi32>
    %36 = arith.cmpi eq, %31, %35 : vector<24x1xi32>
    %c1 = arith.constant 1 : index
    %c0_17 = arith.constant 0 : index
    %37 = vector.load %arg5[%c1, %c0_17] : memref<2x512xf32, #tpu.memory_space<vmem>>, vector<1x512xf32>
    %cst_18 = arith.constant 0.000000e+00 : f32
    %38 = vector.shape_cast %36 : vector<24x1xi1> to vector<24x1xi1>
    %39 = vector.broadcast %38 : vector<24x1xi1> to vector<24x512xi1>
    %40 = vector.shape_cast %37 : vector<1x512xf32> to vector<1x512xf32>
    %41 = vector.broadcast %40 : vector<1x512xf32> to vector<24x512xf32>
    %42 = vector.broadcast %cst_18 : f32 to vector<24x512xf32>
    %43 = arith.select %39, %41, %42 : vector<24x512xi1>, vector<24x512xf32>
    %44 = vector.shape_cast %33 : vector<24x1xi1> to vector<24x1xi1>
    %45 = vector.broadcast %44 : vector<24x1xi1> to vector<24x512xi1>
    %46 = vector.shape_cast %34 : vector<1x512xf32> to vector<1x512xf32>
    %47 = vector.broadcast %46 : vector<1x512xf32> to vector<24x512xf32>
    %48 = arith.select %45, %47, %43 : vector<24x512xi1>, vector<24x512xf32>
    %49 = vector.extract_strided_slice %3 {offsets = [0, 1], sizes = [24, 1], strides = [1, 1]} : vector<24x3xf32> to vector<24x1xf32>
    %50 = vector.broadcast %49 : vector<24x1xf32> to vector<24x512xf32>
    %51 = arith.mulf %50, %14 : vector<24x512xf32>
    %52 = vector.extract_strided_slice %3 {offsets = [0, 2], sizes = [24, 1], strides = [1, 1]} : vector<24x3xf32> to vector<24x1xf32>
    %53 = vector.broadcast %52 : vector<24x1xf32> to vector<24x512xf32>
    %54 = arith.addf %51, %53 : vector<24x512xf32>
    %55 = arith.mulf %54, %14 : vector<24x512xf32>
    %56 = arith.addf %55, %48 : vector<24x512xf32>
    %c0_19 = arith.constant 0 : index
    %c0_20 = arith.constant 0 : index
    %57 = vector.load %arg7[%c0_19, %c0_20] : memref<24x512xf32, #tpu.memory_space<vmem>>, vector<24x512xf32>
    tpu.vector_store %arg7[%c0_19, %c0_20], %56 {strides = array<i32>} : memref<24x512xf32, #tpu.memory_space<vmem>>, vector<24x512xf32>,
    return
  }
  func.func @transform_0(%arg0: i32, %arg1: memref<2xi32, #tpu.memory_space<smem>>) -> (i32, i32) {
    %c0_i32 = arith.constant 0 : i32
    %c0_i32_0 = arith.constant 0 : i32
    return %c0_i32, %arg0 : i32, i32
  }
  func.func @transform_1(%arg0: i32, %arg1: memref<2xi32, #tpu.memory_space<smem>>) -> (i32, i32, i32) {
    %0 = arith.index_cast %arg0 : i32 to index
    %1 = memref.load %arg1[%0] : memref<2xi32, #tpu.memory_space<smem>>
    %c0_i32 = arith.constant 0 : i32
    %c0_i32_0 = arith.constant 0 : i32
    %c0_i32_1 = arith.constant 0 : i32
    return %1, %c0_i32, %c0_i32_0 : i32, i32, i32
  }
  func.func @transform_2(%arg0: i32, %arg1: memref<2xi32, #tpu.memory_space<smem>>) -> (i32, i32, i32) {
    %0 = arith.index_cast %arg0 : i32 to index
    %1 = memref.load %arg1[%0] : memref<2xi32, #tpu.memory_space<smem>>
    %c0_i32 = arith.constant 0 : i32
    %c0_i32_0 = arith.constant 0 : i32
    %c0_i32_1 = arith.constant 0 : i32
    return %1, %c0_i32, %c0_i32_0 : i32, i32, i32
  }
  func.func @transform_3(%arg0: i32, %arg1: memref<2xi32, #tpu.memory_space<smem>>) -> (i32, i32) {
    %c0_i32 = arith.constant 0 : i32
    %c0_i32_0 = arith.constant 0 : i32
    return %c0_i32, %arg0 : i32, i32
  }
  func.func @transform_4(%arg0: i32, %arg1: memref<2xi32, #tpu.memory_space<smem>>) -> (i32, i32) {
    %c0_i32 = arith.constant 0 : i32
    %c0_i32_0 = arith.constant 0 : i32
    return %c0_i32, %arg0 : i32, i32
  }
  func.func @transform_5(%arg0: i32, %arg1: memref<2xi32, #tpu.memory_space<smem>>) -> (i32, i32) {
    %c0_i32 = arith.constant 0 : i32
    %c0_i32_0 = arith.constant 0 : i32
    return %c0_i32, %arg0 : i32, i32
  }
}

</mosaic_0001>

<bundles_post_ra>
// kernel: tile.29
= control target key start
LH: loop header
LB: loop body
LE: loop exit
PB: predicated region body
PF: predicated region fallthrough
CT: control target
= control target key end

     0   :  { %s22_s0 = inlined_call_operand.vmem [shape: f32[64], index: 0, kind: input, shape index: {}]   ;;  %s23_s1 = inlined_call_operand.vmem [shape: f32[2,64], index: 1, kind: output, shape index: {}]  }
   0x1   :  { %v4_v0 = vld [vmem:[%s22_s0] ss:$0 sm:$0xff] }
   0x2   :  { %5 = vst [vmem:[%s23_s1] sm:$0x3] %v4_v0 }

// kernel: tile.31
= control target key start
LH: loop header
LB: loop body
LE: loop exit
PB: predicated region body
PF: predicated region fallthrough
CT: control target
= control target key end

     0   :  { %vm7_vm0 = vcmask 523264   ;;  %vm13_vm1 = vcmask 1048064   ;;  %s39_s0 = inlined_call_operand.vmem [shape: f32[2,64], index: 0, kind: input, shape index: {}]   ;;  %s40_s1 = inlined_call_operand.vmem [shape: f32[1,128], index: 1, kind: output, shape index: {}]  }
   0x1   :  { %v4_v0 = vld [vmem:[%s39_s0] sm:$0x3]  ;;  %s22_s0 = smov 64  }
   0x2   :  { %5 = vst [vmem:[#allocation1] sm:$0x3] %v4_v0 }
   0x9   :  { %v10_v1 = vld [vmem:[#allocation1 + $0x1] sm:$0x1]   ;;  %v6_v2 = vld [vmem:[#allocation1] sm:$0x1]  }
   0xa   :  { %11 = vrot.lane.b32.xlu0 %v10_v1, %s22_s0  ;;  %8 = vst.msk [vmem:[#allocation0] sm:$0x1] %vm7_vm0, %v6_v2  }
  0x7c   :  { %v12_v3 = vpop.permute.xlu0 %11  }
  0x7d   :  { %14 = vst.msk [vmem:[#allocation0] sm:$0x1] %vm13_vm1, %v12_v3  }
  0x84   :  { %v18_v4 = vld [vmem:[#allocation0] sm:$0x1] }
  0x85   :  { %20 = vst [vmem:[%s40_s1] sm:$0x1] %v18_v4 }

// kernel: detect_forward.1
= control target key start
LH: loop header
LB: loop body
LE: loop exit
PB: predicated region body
PF: predicated region fallthrough
CT: control target
= control target key end

     0   :  { %s1566_s0 = inlined_call_operand.vmem [shape: s32[2], index: 0, kind: input, shape index: {}]   ;;  %s1567_s1 = inlined_call_operand.vmem [shape: f32[16,1024], index: 1, kind: input, shape index: {}]   ;;  %s1568_s2 = inlined_call_operand.vmem [shape: f32[2,24,16], index: 2, kind: input, shape index: {}]   ;;  %s1569_s3 = inlined_call_operand.vmem [shape: f32[2,24,3], index: 3, kind: input, shape index: {}]   ;;  %s1570_s4 = inlined_call_operand.vmem [shape: f32[2,1024], index: 4, kind: input, shape index: {}]   ;;  %s1571_s5 = inlined_call_operand.vmem [shape: f32[24,1024], index: 5, kind: output, shape index: {0}]   ;;  %s1572_s6 = inlined_call_operand.vmem [shape: f32[24,1024], index: 6, kind: output, shape index: {1}]  }
   0x1   :  { %s12_s23 = sshll.u32 %s1566_s0, 4  ;;  %s13_s23 = int_to_ptr.vmem [resolvable:$true] %s12_s23 }
   0x2   :  { %s1199_s24 = scalar_lea.vmem %s13_s23, 16  ;;  %p1204_p1 = scmp.lt.s32.totalorder %s13_s23, %s13_s23 }
   0x3   :  { %p1200_p0 = scmp.ne.s32.totalorder %s13_s23, %s1199_s24  ;;  %p1205_p2 = scmp.lt.s32.totalorder %s1199_s24, %s1199_s24 }
   0x5   :  { %p1206_p3 = por %p1205_p2, %p1204_p1 }
   0x7   :  { %p1207_p4 = pnand %p1206_p3, %p1200_p0 }
   0x9   :  { %1210 = shalt.err (!%p1207_p4)  }
   0xa   :  { %s1237_s25 = smov [#allocation3]  }
   0xb   :  { %15 = dma.vmem_to_smem %s13_s23, 16, %s1237_s25, [#allocation2] }
   0xc   :  { %1223 = dma.done.wait [#allocation2], 16 }
   0xd   :  { %1224 = vsyncadd [#allocation2], 4294967280 }
   0xe   :  { %17 = sfence }
   0xf   :  { %s1280_s26 = smov 0   ;;  %s1282_s27 = smov 0  }
  0x10   :  { %s1284_s28 = smov 0  }
  0x11 LB: > { %s1296_s0 = sadd.s32 4294967295, %s1235_s28   ;;  %s1299_s29 = sadd.s32 1, %s1235_s28   ;;  %s1235_s28 = sphi %s1284_s28, %s1589_s28   ;;  %s1231_s27 = sphi %s1282_s27, %s1588_s27   ;;  %s1227_s26 = sphi %s1280_s26, %s1587_s26  }
  0x12   : > { %s27_s30 = ssub.s32 %s1235_s28, %s1299_s29  ;;  %s30_s7 = sadd.s32 1, %s1231_s27 }
  0x13   : > { %p28_p5 = scmp.eq.s32.totalorder %s27_s30, 0  ;;  %p37_p6 = scmp.ne.s32.totalorder %s1231_s27, %s1227_s26 }
  0x14   : > { %p38_p7 = scmp.eq.s32.totalorder %s1235_s28, 0  ;;  %p149_p8 = scmp.eq.s32.totalorder %s1296_s0, 1 }
  0x15   : > { %s1309_s8 = scalar_select %p28_p5, %s1231_s27, %s30_s7  }
  0x16   : > { %p39_p9 = por %p38_p7, %p37_p6  ;;  %p1311_p10 = por %p149_p8, %p37_p6 }
  0x17   : > { %p1067_p11 = scmp.ge.s32.totalorder %s1235_s28, 2 }
  0x19   : > { %197 = sbr.rel (%p1067_p11) target bundleno = 40 (0x28), region = 16 }
  0x20   : > { %200 = sbr.rel (!%p39_p9) target bundleno = 40 (0x28), region = 20  ;;  %s202_s10 = sand.u32 (%p39_p9), 1, %s1231_s27  }
  0x21   : > { %s1102_s11 = sshll.u32 (%p39_p9), %s1235_s28, 5  ;;  %s1068_s12 = sshll.u32 (%p39_p9), %s202_s10, 6 }
  0x22   : > { %s207_s15 = scalar_lea.vmem (%p39_p9), %s1567_s1, %s1102_s11  ;;  %s204_s16 = scalar_lea.vmem (%p39_p9), [#allocation4], %s1068_s12 }
  0x23   : > { %v220_v0 = vld [vmem:[%s207_s15] sm:$0xff] (%p39_p9)  ;;  %v222_v1 = vld [vmem:[%s207_s15 + $0x8] sm:$0xff] (%p39_p9)  ;;  %v224_v2 = vld [vmem:[%s207_s15 + $0x10] sm:$0xff] (%p39_p9) }
  0x24   : > { %221 = vst [vmem:[%s204_s16] sm:$0xff] (%p39_p9), %v220_v0  ;;  %223 = vst [vmem:[%s204_s16 + $0x8] sm:$0xff] (%p39_p9), %v222_v1  ;;  %v226_v3 = vld [vmem:[%s207_s15 + $0x18] sm:$0xff] (%p39_p9)  ;;  %v228_v4 = vld [vmem:[%s207_s15 + $0x40] sm:$0xff] (%p39_p9) }
  0x25   : > { %225 = vst [vmem:[%s204_s16 + $0x10] sm:$0xff] (%p39_p9), %v224_v2  ;;  %v230_v5 = vld [vmem:[%s207_s15 + $0x48] sm:$0xff] (%p39_p9)  ;;  %227 = vst [vmem:[%s204_s16 + $0x18] sm:$0xff] (%p39_p9), %v226_v3  ;;  %v232_v6 = vld [vmem:[%s207_s15 + $0x50] sm:$0xff] (%p39_p9) }
  0x26   : > { %229 = vst [vmem:[%s204_s16 + $0x20] sm:$0xff] (%p39_p9), %v228_v4  ;;  %231 = vst [vmem:[%s204_s16 + $0x28] sm:$0xff] (%p39_p9), %v230_v5  ;;  %v234_v7 = vld [vmem:[%s207_s15 + $0x58] sm:$0xff] (%p39_p9) }
  0x27   : > { %233 = vst [vmem:[%s204_s16 + $0x30] sm:$0xff] %v232_v6  ;;  %235 = vst [vmem:[%s204_s16 + $0x38] sm:$0xff] %v234_v7 }
  0x28 PF: > { %p1071_p12 = scmp.ge.s32.totalorder %s1235_s28, 1  ;;  %p269_p13 = scmp.lt.s32.totalorder %s1235_s28, 3 }
  0x2a   : > { %p270_p0 = pnand %p1071_p12, %p269_p13 }
  0x2b   : > { %s276_s17 = sand.u32 (!%p270_p0), 1, %s1227_s26   ;;  %s324_s18 = sld [smem:[#allocation3 + %s1296_s0]] (!%p270_p0)  ;;  %v1238_v8 = vmov (!%p270_p0), 0.0   ;;  %v1239_v9 = vmov (!%p270_p0), 0   ;;  %vm375_vm0 = vcmask (!%p270_p0), 130048   ;;  %v1240_v28 = vmov (!%p270_p0), 1  }
  0x2c   : > { %273 = sbr.rel (%p270_p0) target bundleno = 326 (0x146), region = 55  ;;  %s1072_s19 = sshll.u32 (!%p270_p0), %s276_s17, 6  ;;  %449 = vmatprep.mubr.f32.mxu0 (!%p270_p0), %v1238_v8  ;;  %532 = vmatprep.mubr.f32.mxu1 (!%p270_p0), %v1238_v8  ;;  %v1241_v29 = vmov (!%p270_p0), 2   ;;  %v635_v42 = vlaneseq (!%p270_p0) }
  0x2d   : > { %1145 = vset.pattern.permute.xlu0 (!%p270_p0), %v1239_v9  ;;  %s331_s20 = sld [smem:[#allocation3 + %s1296_s0]] (!%p270_p0)  ;;  %1146 = vset.pattern.permute.xlu1 (!%p270_p0), %v1239_v9  ;;  %s278_s21 = scalar_lea.vmem (!%p270_p0), [#allocation4], %s1072_s19 }
  0x2e   : > { %v353_v10 = vld [vmem:[%s278_s21 + $0x8] sm:$0xff] (!%p270_p0)  ;;  %v355_v12 = vld [vmem:[%s278_s21 + $0x18] sm:$0xff] (!%p270_p0)  ;;  %v352_v15 = vld [vmem:[%s278_s21] sm:$0xff] (!%p270_p0)  ;;  %s1342_s11 = smul.u32 (!%p270_p0), 96, %s276_s17  ;;  %s1075_s12 = sshll.u32 (!%p270_p0), %s1296_s0, 2  ;;  %v1363_v56 = vshrl.u32 (!%p270_p0), %v635_v42, 7 }
  0x2f   : > { %v357_v11 = vld [vmem:[%s278_s21 + $0x28] sm:$0xff] (!%p270_p0)  ;;  %v359_v14 = vld [vmem:[%s278_s21 + $0x38] sm:$0xff] (!%p270_p0)  ;;  %v356_v16 = vld [vmem:[%s278_s21 + $0x20] sm:$0xff] (!%p270_p0)  ;;  %p1345_p3 = scmp.lt.s32.totalorder (!%p270_p0), %s1075_s12, 7 }
  0x30   : > { %v1105_v13 = vpack.c.bf16 (!%p270_p0), %v357_v11, %v353_v10  ;;  %v1109_v17 = vpack.c.bf16 (!%p270_p0), %v359_v14, %v355_v12  ;;  %v1107_v18 = vpack.c.bf16 (!%p270_p0), %v356_v16, %v352_v15  ;;  %v354_v19 = vld [vmem:[%s278_s21 + $0x10] sm:$0xff] (!%p270_p0)  ;;  %s1350_s26 = scalar_lea.vmem (!%p270_p0), [#allocation5], %s1342_s11  ;;  %v693_v7 = vsub.s32 (!%p270_p0), 0, %v1363_v56 }
  0x31   : > { %v358_v20 = vld [vmem:[%s278_s21 + $0x30] sm:$0xff] (!%p270_p0)  ;;  %p325_p1 = scmp.lt.s32.totalorder (!%p270_p0), %s324_s18, 1  ;;  %v701_v10 = vsub.s32 (!%p270_p0), 2, %v1363_v56  ;;  %v697_v11 = vsub.s32 (!%p270_p0), 1, %v1363_v56  ;;  %v637_v14 = vadd.s32 (!%p270_p0), 8, %v1363_v56 }
  0x32   : > { %1106 = vmatprep.subr.bf16.mxu0 (!%p270_p0), %v1105_v13  ;;  %v1111_v21 = vpack.c.bf16 (!%p270_p0), %v358_v20, %v354_v19  ;;  %1110 = vmatprep.subr.bf16.mxu1 (!%p270_p0), %v1109_v17 }
  0x33   : > { %1108 = vmatpush1.bf16.msra.mxu0 %v1107_v18  ;;  %s1591_s18 = smov (!%p325_p1, %s324_s18), 1  ;;  %p332_p2 = scmp.lt.s32.totalorder %s331_s20, 1  ;;  %v705_v18 = vsub.s32 3, %v1363_v56 }
  0x34   : > { %1112 = vmatpush1.bf16.msra.mxu1 %v1111_v21  ;;  %s1114_s22 = smul.u32 24, %s1591_s18  ;;  %s1595_s12 = smov (!%p1345_p3, %s1075_s12), 7 }
  0x35   : > { %s1593_s20 = smov (!%p332_p2, %s331_s20), 1  ;;  %s1076_s14 = sshll.u32 %s1595_s12, 1 }
  0x36   : > { %s329_s25 = scalar_lea.vmem %s1568_s2, %s1114_s22  ;;  %s1115_s28 = smul.u32 24, %s1593_s20 }
  0x37   : > { %v346_v22 = vld [vmem:[%s329_s25] sm:$0xff]  ;;  %v347_v23 = vld [vmem:[%s329_s25 + $0x8] sm:$0xff]  ;;  %v348_v27 = vld [vmem:[%s329_s25 + $0x10] sm:$0xff]  ;;  %s342_s17 = scalar_lea.vmem %s1570_s4, %s1076_s14  ;;  %s1493_s18 = scalar_lea.vmem [#allocation6], %s1342_s11 }
  0x38   : > { %1077 = vmatmul.mubr.msk.f32.vlgmr.msra.gmra.mrb[0].mxu0 %vm375_vm0, %v346_v22  ;;  %1080 = vmatmul.mubr.msk.f32.vlgmr.msra.gmra.mrb[0].mxu1 %vm375_vm0, %v346_v22  ;;  %s336_s10 = scalar_lea.vmem %s1569_s3, %s1115_s28  ;;  %v678_v9 = vld [vmem:[%s342_s17] ss:$2 sm:$0xf]  ;;  %v1095_v13 = vld [vmem:[%s342_s17 + $0x1] ss:$2 sm:$0xf] }
  0x39   : > { %455 = vmatprep.mubr.f32.mxu0 %v1238_v8  ;;  %538 = vmatprep.mubr.f32.mxu1 %v1238_v8  ;;  %v349_v24 = vld [vmem:[%s336_s10] sm:$0xff]  ;;  %v351_v25 = vld [vmem:[%s336_s10 + $0x10] sm:$0xff]  ;;  %v350_v26 = vld [vmem:[%s336_s10 + $0x8] sm:$0xff]  ;;  %v1382_v19 = vrot.slane %v678_v9, %v693_v7  ;;  %s1103_s19 = sshll.u32 (%p1311_p10), %s1296_s0, 5 }
  0x3a   : > { %362 = vperm.xlu0 %1145, %v349_v24   ;;  %372 = vperm.xlu1 %1146, %v351_v25   ;;  %s859_s22 = scalar_lea.vmem (%p1311_p10), %s1571_s5, %s1103_s19 }
  0x3c   : > { %1078 = vmatmul.mubr.msk.f32.gmra.mrb[2].mxu0 %vm375_vm0, %v347_v23  ;;  %1081 = vmatmul.mubr.msk.f32.gmra.mrb[2].mxu1 %vm375_vm0, %v347_v23 }
  0x3d   : > { %461 = vmatprep.mubr.f32.mxu0 %v1238_v8  ;;  %544 = vmatprep.mubr.f32.mxu1 %v1238_v8  ;;  %v643_v8 = vand.u32 7, %v1363_v56 }
  0x3e   : > { %367 = vperm.xlu0 %1145, %v350_v26   ;;  %1147 = vset.pattern.permute.xlu1 %v1240_v28 }
  0x3f   : > { %763 = vperm.xlu1 %1147, %v349_v24   ;;  %vm1384_vm1 = vcmp.eq.s32.totalorder %v643_v8, 0  ;;  %vm1388_vm2 = vcmp.eq.s32.totalorder %v643_v8, 1 }
  0x40   : > { %1079 = vmatmul.mubr.msk.f32.gmra.mrb[4].mxu0 %vm375_vm0, %v348_v27  ;;  %1082 = vmatmul.mubr.msk.f32.gmra.mrb[4].mxu1 %vm375_vm0, %v348_v27  ;;  %v1394_v27 = vrot.slane %v1095_v13, %v693_v7 }
  0x42   : > { %1148 = vset.pattern.permute.xlu0 %v1240_v28  ;;  %v1396_v28 = vrot.slane %v1095_v13, %v697_v11 }
  0x43   : > { %767 = vperm.xlu0 %1148, %v350_v26   ;;  %771 = vperm.xlu1 %1147, %v351_v25  }
  0x47   : > { %1150 = vset.pattern.permute.xlu0 %v1241_v29  ;;  %1149 = vset.pattern.permute.xlu1 %v1241_v29 }
  0x48   : > { %791 = vperm.xlu0 %1150, %v350_v26   ;;  %787 = vperm.xlu1 %1149, %v349_v24   ;;  %v1392_v24 = vrot.slane %v678_v9, %v701_v10 }
  0x4c   : > { %795 = vperm.xlu1 %1149, %v351_v25  }
  0xb9   : > { %v363_v30 = vpop.permute.xlu0 %362  ;;  %v373_v53 = vpop.permute.xlu1 %372 }
  0xbd   : > { %v368_v39 = vpop.permute.xlu0 %367 }
  0xbe   : > { %v1379_v17 = vpop.permute.xlu1 %763 }
 0x10b   : > { %v451_v31 = vpop.f32.mrb[0].mxu0  ;;  %v534_v32 = vpop.f32.mrb[0].mxu1 }
 0x10c   : > { %v452_v33 = vadd.f32 %v451_v31, %v363_v30  ;;  %v535_v34 = vadd.f32 %v534_v32, %v363_v30  ;;  %v453_v35 = vpop.f32.mrb[1].mxu0  ;;  %v536_v36 = vpop.f32.mrb[1].mxu1  ;;  %v1398_v31 = vrot.slane %v1095_v13, %v701_v10  ;;  %v650_v32 = vand.u32 7, %v637_v14 }
 0x10d   : > { %v454_v37 = vadd.f32 %v453_v35, %v363_v30  ;;  %v537_v38 = vadd.f32 %v536_v36, %v363_v30  ;;  %v1400_v35 = vrot.slane %v1095_v13, %v705_v18  ;;  %v638_v36 = vadd.s32 16, %v1363_v56 }
 0x10e   : > { %551 = vst [vmem:[%s1350_s26] sm:$0xff] %v452_v33  ;;  %v1083_v40 = vmul.f32 -1.442695, %v452_v33  ;;  %553 = vst [vmem:[%s1350_s26 + $0x10] sm:$0xff] %v535_v34  ;;  %v1085_v41 = vmul.f32 -1.442695, %v535_v34  ;;  %vm1418_vm3 = vcmp.eq.s32.totalorder %v650_v32, 1 }
 0x10f   : > { %552 = vst [vmem:[%s1350_s26 + $0x8] sm:$0xff] %v454_v37  ;;  %v1084_v43 = vmul.f32 -1.442695, %v454_v37  ;;  %554 = vst [vmem:[%s1350_s26 + $0x18] sm:$0xff] %v537_v38  ;;  %v1086_v44 = vmul.f32 -1.442695, %v537_v38 }
 0x110   : > { %v457_v45 = vpop.f32.mrb[2].mxu0  ;;  %v540_v46 = vpop.f32.mrb[2].mxu1  ;;  %1151 = vpow2.f32 %v1083_v40  ;;  %v1405_v40 = vrot.slane %v678_v9, %v705_v18  ;;  %vm1428_vm4 = vcmp.eq.s32.totalorder %v650_v32, 0 }
 0x111   : > { %v458_v47 = vadd.f32 %v457_v45, %v368_v39  ;;  %v541_v48 = vadd.f32 %v540_v46, %v368_v39  ;;  %v459_v49 = vpop.f32.mrb[3].mxu0  ;;  %v542_v50 = vpop.f32.mrb[3].mxu1  ;;  %1153 = vpow2.f32 %v1085_v41  ;;  %v712_v45 = vsel %vm1388_vm2, %v1396_v28, 0.0 }
 0x112   : > { %v460_v51 = vadd.f32 %v459_v49, %v368_v39  ;;  %v543_v52 = vadd.f32 %v542_v50, %v368_v39  ;;  %1155 = vpow2.f32 %v1084_v43  ;;  %v1403_v39 = vrot.slane %v678_v9, %v697_v11  ;;  %v1407_v43 = vpop.permute.xlu1 %771 }
 0x113   : > { %555 = vst [vmem:[%s1350_s26 + $0x20] sm:$0xff] %v458_v47  ;;  %v1087_v54 = vmul.f32 -1.442695, %v458_v47  ;;  %557 = vst [vmem:[%s1350_s26 + $0x30] sm:$0xff] %v541_v48  ;;  %v1089_v55 = vmul.f32 -1.442695, %v541_v48  ;;  %1157 = vpow2.f32 %v1086_v44 }
 0x114   : > { %556 = vst [vmem:[%s1350_s26 + $0x28] sm:$0xff] %v460_v51  ;;  %v1088_v57 = vmul.f32 -1.442695, %v460_v51  ;;  %558 = vst [vmem:[%s1350_s26 + $0x38] sm:$0xff] %v543_v52  ;;  %v1090_v58 = vmul.f32 -1.442695, %v543_v52 }
 0x115   : > { %v463_v59 = vpop.f32.mrb[4].mxu0  ;;  %v546_v60 = vpop.f32.mrb[4].mxu1  ;;  %1159 = vpow2.f32 %v1087_v54  ;;  %v711_v44 = vsel %vm1388_vm2, %v1394_v27, 0.0  ;;  %v713_v48 = vsel %vm1388_vm2, %v1398_v31, 0.0  ;;  %v714_v52 = vsel %vm1388_vm2, %v1400_v35, 0.0 }
 0x116   : > { %v464_v61 = vadd.f32 %v463_v59, %v373_v53  ;;  %v547_v62 = vadd.f32 %v546_v60, %v373_v53  ;;  %v465_v63 = vpop.f32.mrb[5].mxu0  ;;  %v548_v0 = vpop.f32.mrb[5].mxu1  ;;  %1161 = vpow2.f32 %v1089_v55  ;;  %v750_v56 = vsel %vm1384_vm1, %v1382_v19, %v711_v44 }
 0x117   : > { %v466_v1 = vadd.f32 %v465_v63, %v373_v53  ;;  %v549_v2 = vadd.f32 %v548_v0, %v373_v53  ;;  %1163 = vpow2.f32 %v1088_v57  ;;  %v657_v53 = vand.u32 7, %v638_v36  ;;  %v768_v60 = vpop.permute.xlu0 %767 }
 0x118   : > { %559 = vst [vmem:[%s1350_s26 + $0x40] sm:$0xff] %v464_v61  ;;  %v1091_v3 = vmul.f32 -1.442695, %v464_v61  ;;  %561 = vst [vmem:[%s1350_s26 + $0x50] sm:$0xff] %v547_v62  ;;  %v1093_v4 = vmul.f32 -1.442695, %v547_v62  ;;  %1165 = vpow2.f32 %v1090_v58  ;;  %v753_v9 = vsel %vm1384_vm1, %v1405_v40, %v714_v52 }
 0x119   : > { %560 = vst [vmem:[%s1350_s26 + $0x48] sm:$0xff] %v466_v1  ;;  %v1092_v5 = vmul.f32 -1.442695, %v466_v1  ;;  %562 = vst [vmem:[%s1350_s26 + $0x58] sm:$0xff] %v549_v2  ;;  %v1094_v6 = vmul.f32 -1.442695, %v549_v2 }
 0x11a   : > { %1167 = vpow2.f32 %v1091_v3  ;;  %v1152_v12 = vpop.eup %1151  ;;  %v715_v61 = vsel %vm1418_vm3, %v1394_v27, 0.0  ;;  %v716_v62 = vsel %vm1418_vm3, %v1396_v28, 0.0  ;;  %v717_v0 = vsel %vm1418_vm3, %v1398_v31, 0.0 }
 0x11b   : > { %1169 = vpow2.f32 %v1093_v4  ;;  %v1154_v15 = vpop.eup %1153  ;;  %v599_v16 = vadd.f32 1.0, %v1152_v12  ;;  %v718_v1 = vsel %vm1418_vm3, %v1400_v35, 0.0  ;;  %v751_v3 = vsel %vm1384_vm1, %v1403_v39, %v712_v45 }
 0x11c   : > { %1171 = vpow2.f32 %v1092_v5  ;;  %v1156_v20 = vpop.eup %1155  ;;  %v601_v21 = vadd.f32 1.0, %v1154_v15  ;;  %v752_v4 = vsel %vm1384_vm1, %v1392_v24, %v713_v48  ;;  %v788_v5 = vpop.permute.xlu1 %787  ;;  %vm1450_vm5 = vcmp.eq.s32.totalorder %v657_v53, 1 }
 0x11d   : > { %1173 = vpow2.f32 %v1094_v6  ;;  %v1158_v25 = vpop.eup %1157  ;;  %v600_v26 = vadd.f32 1.0, %v1156_v20  ;;  %v754_v10 = vsel %vm1428_vm4, %v1382_v19, %v715_v61  ;;  %v755_v13 = vsel %vm1428_vm4, %v1403_v39, %v716_v62 }
 0x11e   : > { %1175 = vrcp.f32 %v599_v16  ;;  %v602_v30 = vadd.f32 1.0, %v1158_v25  ;;  %v756_v14 = vsel %vm1428_vm4, %v1392_v24, %v717_v0  ;;  %v757_v15 = vsel %vm1428_vm4, %v1405_v40, %v718_v1 }
 0x11f   : > { %v1160_v29 = vpop.eup %1159  ;;  %1177 = vrcp.f32 %v601_v21  ;;  %vm1472_vm6 = vcmp.eq.s32.totalorder %v657_v53, 0  ;;  %v719_v22 = vsel %vm1450_vm5, %v1394_v27, 0.0  ;;  %v721_v32 = vsel %vm1450_vm5, %v1398_v31, 0.0  ;;  %v876_v21 = vld [vmem:[%s1350_s26 + $0x10] sm:$0xff] (%p1311_p10) }
 0x120   : > { %v1162_v33 = vpop.eup %1161  ;;  %1179 = vrcp.f32 %v600_v26  ;;  %v603_v34 = vadd.f32 1.0, %v1160_v29  ;;  %v792_v29 = vpop.permute.xlu0 %791  ;;  %v722_v27 = vsel %vm1450_vm5, %v1400_v35, 0.0  ;;  %877 = vst [vmem:[%s859_s22 + $0x10] sm:$0xff] (%p1311_p10), %v876_v21 }
 0x121   : > { %v1164_v37 = vpop.eup %1163  ;;  %1181 = vrcp.f32 %v602_v30  ;;  %v605_v38 = vadd.f32 1.0, %v1162_v33  ;;  %v720_v30 = vsel %vm1450_vm5, %v1396_v28, 0.0  ;;  %v758_v28 = vsel %vm1472_vm6, %v1382_v19, %v719_v22 }
 0x122   : > { %v1166_v41 = vpop.eup %1165  ;;  %1183 = vrcp.f32 %v603_v34  ;;  %v604_v42 = vadd.f32 1.0, %v1164_v37 }
 0x123   : > { %1185 = vrcp.f32 %v605_v38  ;;  %v606_v47 = vadd.f32 1.0, %v1166_v41 }
 0x124   : > { %v1168_v46 = vpop.eup %1167  ;;  %1187 = vrcp.f32 %v604_v42 }
 0x125   : > { %v1170_v50 = vpop.eup %1169  ;;  %v607_v51 = vadd.f32 1.0, %v1168_v46  ;;  %1189 = vrcp.f32 %v606_v47 }
 0x126   : > { %v1172_v54 = vpop.eup %1171  ;;  %v609_v55 = vadd.f32 1.0, %v1170_v50 }
 0x127   : > { %v1174_v58 = vpop.eup %1173  ;;  %1191 = vrcp.f32 %v607_v51  ;;  %v608_v59 = vadd.f32 1.0, %v1172_v54 }
 0x128   : > { %1193 = vrcp.f32 %v609_v55  ;;  %v610_v63 = vadd.f32 1.0, %v1174_v58  ;;  %v1176_v2 = vpop.eup %1175 }
 0x129   : > { %1195 = vrcp.f32 %v608_v59  ;;  %v1178_v7 = vpop.eup %1177  ;;  %v774_v8 = vmul.f32 %v1176_v2, %v1379_v17 }
 0x12a   : > { %1197 = vrcp.f32 %v610_v63  ;;  %v1180_v11 = vpop.eup %1179  ;;  %v776_v12 = vmul.f32 %v1178_v7, %v1379_v17 }
 0x12b   : > { %v1182_v16 = vpop.eup %1181  ;;  %v775_v18 = vmul.f32 %v1180_v11, %v1379_v17  ;;  %v798_v20 = vadd.f32 %v788_v5, %v774_v8  ;;  %v760_v8 = vsel %vm1472_vm6, %v1392_v24, %v721_v32  ;;  %v888_v32 = vld [vmem:[%s1350_s26 + $0x40] sm:$0xff] (%p1311_p10) }
 0x12c   : > { %v1184_v23 = vpop.eup %1183  ;;  %v777_v25 = vmul.f32 %v1182_v16, %v1379_v17  ;;  %v800_v26 = vadd.f32 %v788_v5, %v776_v12  ;;  %889 = vst [vmem:[%s859_s22 + $0x80] sm:$0xff] (%p1311_p10), %v888_v32 }
 0x12d   : > { %v1186_v33 = vpop.eup %1185  ;;  %v799_v34 = vadd.f32 %v788_v5, %v775_v18  ;;  %v810_v36 = vmul.f32 %v1176_v2, %v798_v20  ;;  %v778_v37 = vmul.f32 %v1184_v23, %v768_v60 }
 0x12e   : > { %v1188_v38 = vpop.eup %1187  ;;  %v801_v17 = vadd.f32 %v788_v5, %v777_v25  ;;  %v812_v41 = vmul.f32 %v1178_v7, %v800_v26  ;;  %v780_v42 = vmul.f32 %v1186_v33, %v768_v60  ;;  %v880_v25 = vld [vmem:[%s1350_s26 + $0x20] sm:$0xff] (%p1311_p10)  ;;  %v882_v26 = vld [vmem:[%s1350_s26 + $0x28] sm:$0xff] (%p1311_p10) }
 0x12f   : > { %v1190_v44 = vpop.eup %1189  ;;  %v811_v45 = vmul.f32 %v1180_v11, %v799_v34  ;;  %v822_v31 = vadd.f32 %v810_v36, %v750_v56  ;;  %v779_v46 = vmul.f32 %v1188_v38, %v768_v60  ;;  %v802_v47 = vadd.f32 %v792_v29, %v778_v37  ;;  %881 = vst [vmem:[%s859_s22 + $0x40] sm:$0xff] (%p1311_p10), %v880_v25  ;;  %v892_v34 = vld [vmem:[%s1350_s26 + $0x50] sm:$0xff] (%p1311_p10)  ;;  %v894_v36 = vld [vmem:[%s1350_s26 + $0x58] sm:$0xff] (%p1311_p10) }
 0x130   : > { %v813_v49 = vmul.f32 %v1182_v16, %v801_v17  ;;  %v824_v50 = vadd.f32 %v812_v41, %v752_v4  ;;  %v781_v51 = vmul.f32 %v1190_v44, %v768_v60  ;;  %v804_v52 = vadd.f32 %v792_v29, %v780_v42  ;;  %v796_v60 = vpop.permute.xlu1 %795  ;;  %883 = vst [vmem:[%s859_s22 + $0x48] sm:$0xff] (%p1311_p10), %v882_v26 }
 0x131   : > { %v1192_v48 = vpop.eup %1191  ;;  %v823_v53 = vadd.f32 %v811_v45, %v751_v3  ;;  %834 = vst [vmem:[%s1493_s18] sm:$0xff] %v822_v31  ;;  %v803_v54 = vadd.f32 %v792_v29, %v779_v46  ;;  %v814_v19 = vmul.f32 %v1184_v23, %v802_v47  ;;  %v878_v23 = vld [vmem:[%s1350_s26 + $0x18] sm:$0xff] (%p1311_p10)  ;;  %893 = vst [vmem:[%s859_s22 + $0x90] sm:$0xff] (%p1311_p10), %v892_v34 }
 0x132   : > { %v1194_v35 = vpop.eup %1193  ;;  %v782_v55 = vmul.f32 %v1192_v48, %v1407_v43  ;;  %v825_v57 = vadd.f32 %v813_v49, %v753_v9  ;;  %836 = vst [vmem:[%s1493_s18 + $0x10] sm:$0xff] %v824_v50  ;;  %v805_v58 = vadd.f32 %v792_v29, %v781_v51  ;;  %v816_v59 = vmul.f32 %v1186_v33, %v804_v52  ;;  %v884_v29 = vld [vmem:[%s1350_s26 + $0x30] sm:$0xff] (%p1311_p10)  ;;  %v890_v33 = vld [vmem:[%s1350_s26 + $0x48] sm:$0xff] (%p1311_p10) }
 0x133   : > { %v1196_v56 = vpop.eup %1195  ;;  %v784_v61 = vmul.f32 %v1194_v35, %v1407_v43  ;;  %835 = vst [vmem:[%s1493_s18 + $0x8] sm:$0xff] %v823_v53  ;;  %v815_v63 = vmul.f32 %v1188_v38, %v803_v54  ;;  %v826_v0 = vadd.f32 %v814_v19, %v754_v10  ;;  %879 = vst [vmem:[%s859_s22 + $0x18] sm:$0xff] (%p1311_p10), %v878_v23 }
 0x134   : > { %v1198_v62 = vpop.eup %1197  ;;  %v783_v1 = vmul.f32 %v1196_v56, %v1407_v43  ;;  %v806_v2 = vadd.f32 %v796_v60, %v782_v55  ;;  %837 = vst [vmem:[%s1493_s18 + $0x18] sm:$0xff] %v825_v57  ;;  %v817_v3 = vmul.f32 %v1190_v44, %v805_v58  ;;  %v828_v4 = vadd.f32 %v816_v59, %v756_v14 }
 0x135   : > { %v785_v5 = vmul.f32 %v1198_v62, %v1407_v43  ;;  %v808_v6 = vadd.f32 %v796_v60, %v784_v61  ;;  %v827_v7 = vadd.f32 %v815_v63, %v755_v13  ;;  %838 = vst [vmem:[%s1493_s18 + $0x20] sm:$0xff] %v826_v0  ;;  %v759_v43 = vsel %vm1472_vm6, %v1403_v39, %v720_v30  ;;  %v872_v39 = vld [vmem:[%s1350_s26] sm:$0xff] (%p1311_p10)  ;;  %v886_v30 = vld [vmem:[%s1350_s26 + $0x38] sm:$0xff] (%p1311_p10) }
 0x136   : > { %v807_v9 = vadd.f32 %v796_v60, %v783_v1  ;;  %v818_v10 = vmul.f32 %v1192_v48, %v806_v2  ;;  %v829_v11 = vadd.f32 %v817_v3, %v757_v15  ;;  %840 = vst [vmem:[%s1493_s18 + $0x30] sm:$0xff] %v828_v4  ;;  %v761_v13 = vsel %vm1472_vm6, %v1405_v40, %v722_v27  ;;  %v874_v40 = vld [vmem:[%s1350_s26 + $0x8] sm:$0xff] (%p1311_p10) }
 0x137   : > { %v809_v12 = vadd.f32 %v796_v60, %v785_v5  ;;  %v820_v14 = vmul.f32 %v1194_v35, %v808_v6  ;;  %839 = vst [vmem:[%s1493_s18 + $0x28] sm:$0xff] %v827_v7  ;;  %856 = sbr.rel (!%p1311_p10) target bundleno = 318 (0x13e), region = 63  ;;  %873 = vst [vmem:[%s859_s22] sm:$0xff] (%p1311_p10), %v872_v39 }
 0x138   : > { %v819_v24 = vmul.f32 %v1196_v56, %v807_v9  ;;  %v830_v16 = vadd.f32 %v818_v10, %v758_v28  ;;  %841 = vst [vmem:[%s1493_s18 + $0x38] sm:$0xff] %v829_v11  ;;  %875 = vst [vmem:[%s859_s22 + $0x8] sm:$0xff] (%p1311_p10), %v874_v40 }
 0x139   : > { %v821_v18 = vmul.f32 %v1198_v62, %v809_v12  ;;  %v832_v20 = vadd.f32 %v820_v14, %v760_v8  ;;  %885 = vst [vmem:[%s859_s22 + $0x50] sm:$0xff] (%p1311_p10), %v884_v29  ;;  %887 = vst [vmem:[%s859_s22 + $0x58] sm:$0xff] (%p1311_p10), %v886_v30 }
 0x13a   : > { %v831_v15 = vadd.f32 %v819_v24, %v759_v43  ;;  %842 = vst [vmem:[%s1493_s18 + $0x40] sm:$0xff] %v830_v16  ;;  %891 = vst [vmem:[%s859_s22 + $0x88] sm:$0xff] (%p1311_p10), %v890_v33 }
 0x13b   : > { %v833_v22 = vadd.f32 %v821_v18, %v761_v13  ;;  %844 = vst [vmem:[%s1493_s18 + $0x50] sm:$0xff] %v832_v20  ;;  %895 = vst [vmem:[%s859_s22 + $0x98] sm:$0xff] (%p1311_p10), %v894_v36 }
 0x13c   : > { %843 = vst [vmem:[%s1493_s18 + $0x48] sm:$0xff] %v831_v15 }
 0x13d   : > { %845 = vst [vmem:[%s1493_s18 + $0x58] sm:$0xff] %v833_v22 }
 0x13e PF: > { %901 = sbr.rel (!%p1311_p10) target bundleno = 326 (0x146), region = 86  ;;  %s1104_s23 = sshll.u32 (%p1311_p10), %s1296_s0, 5  ;;  %v917_v37 = vld [vmem:[%s1493_s18] sm:$0xff] (%p1311_p10)  ;;  %v919_v27 = vld [vmem:[%s1493_s18 + $0x8] sm:$0xff] (%p1311_p10)  ;;  %v921_v38 = vld [vmem:[%s1493_s18 + $0x10] sm:$0xff] (%p1311_p10) }
 0x13f   : > { %s904_s28 = scalar_lea.vmem (%p1311_p10), %s1572_s6, %s1104_s23  ;;  %v923_v17 = vld [vmem:[%s1493_s18 + $0x18] sm:$0xff] (%p1311_p10)  ;;  %v925_v41 = vld [vmem:[%s1493_s18 + $0x20] sm:$0xff] (%p1311_p10)  ;;  %v927_v42 = vld [vmem:[%s1493_s18 + $0x28] sm:$0xff] (%p1311_p10) }
 0x140   : > { %918 = vst [vmem:[%s904_s28] sm:$0xff] (%p1311_p10), %v917_v37  ;;  %920 = vst [vmem:[%s904_s28 + $0x8] sm:$0xff] (%p1311_p10), %v919_v27  ;;  %v929_v28 = vld [vmem:[%s1493_s18 + $0x30] sm:$0xff] (%p1311_p10)  ;;  %v931_v44 = vld [vmem:[%s1493_s18 + $0x38] sm:$0xff] (%p1311_p10) }
 0x141   : > { %922 = vst [vmem:[%s904_s28 + $0x10] sm:$0xff] (%p1311_p10), %v921_v38  ;;  %924 = vst [vmem:[%s904_s28 + $0x18] sm:$0xff] (%p1311_p10), %v923_v17  ;;  %v933_v45 = vld [vmem:[%s1493_s18 + $0x40] sm:$0xff] (%p1311_p10) }
 0x142   : > { %926 = vst [vmem:[%s904_s28 + $0x40] sm:$0xff] (%p1311_p10), %v925_v41  ;;  %928 = vst [vmem:[%s904_s28 + $0x48] sm:$0xff] (%p1311_p10), %v927_v42  ;;  %v937_v46 = vld [vmem:[%s1493_s18 + $0x50] sm:$0xff] (%p1311_p10) }
 0x143   : > { %930 = vst [vmem:[%s904_s28 + $0x50] sm:$0xff] (%p1311_p10), %v929_v28  ;;  %932 = vst [vmem:[%s904_s28 + $0x58] sm:$0xff] (%p1311_p10), %v931_v44  ;;  %v935_v31 = vld [vmem:[%s1493_s18 + $0x48] sm:$0xff] (%p1311_p10) }
 0x144   : > { %934 = vst [vmem:[%s904_s28 + $0x80] sm:$0xff] (%p1311_p10), %v933_v45  ;;  %v939_v47 = vld [vmem:[%s1493_s18 + $0x58] sm:$0xff] (%p1311_p10)  ;;  %936 = vst [vmem:[%s904_s28 + $0x88] sm:$0xff] (%p1311_p10), %v935_v31 }
 0x145   : > { %938 = vst [vmem:[%s904_s28 + $0x90] sm:$0xff] %v937_v46  ;;  %940 = vst [vmem:[%s904_s28 + $0x98] sm:$0xff] %v939_v47 }
 0x146 PF: > { %p20_p4 = scmp.ge.s32.totalorder %s1299_s29, 4   ;;  %s1587_s26 = smov %s1231_s27 }
 0x147   : > { %s1588_s27 = smov %s1309_s8  ;;  %s1589_s28 = smov %s1299_s29 }
 0x148   :  { %22 = sbr.rel (!%p20_p4) target bundleno = 17 (0x11), region = 162 }

</bundles_post_ra>
